<compile_context>
chip_gen: v7x
topology: tpu7x:2x2x1
jax: 0.10.0
libtpu: 0.0.40
codegen_flags: <defaults>
</compile_context>

<pallas_src>
import functools

import numpy as np
import jax
import jax.numpy as jnp
from jax import lax
from jax.experimental import pallas as pl
from jax.experimental.pallas import tpu as pltpu

D = 32                                        # feature dim of the reference module
_INV_SCALE = 1.0 / np.sqrt(32.0)              # inv_scale_factor from the reference
_SCALE_MUL = float(1.0 / _INV_SCALE)          # compile-time multiply (== sqrt(32))
_NEG_BIG = -1e30                              # mask value for cross-head logit blocks


def _choose_group(batch, n_keys):
    """Heads packed per grid step.

    Targets ~128 lanes for the packed key axis (capped at 8), must divide `batch`
    (so the wrapper reshape stays a free, contiguous view), and leaves the grid with
    >= 2 steps when batch > 1 so both v7x TensorCores get work."""
    if batch <= 1:
        return 1
    target = max(1, min(8, -(-128 // max(n_keys, 1))))   # ~ceil(128/N), capped at 8
    g = 1
    for cand in range(1, min(batch, target) + 1):
        if batch % cand == 0:
            g = cand
    if batch // g < 2:                                    # keep >= 2 grid steps (v7x)
        for cand in range(g - 1, 0, -1):
            if batch % cand == 0 and batch // cand >= 2:
                g = cand
                break
    return g


def _attn_kernel(q_ref, k_ref, v_ref, o_ref, *, heads, q_len, k_len):
    """One grid step = `heads` independent attention problems, packed.

    q_ref: (1, heads*q_len, D)   k_ref/v_ref: (1, heads*k_len, D)
    o_ref: (1, heads*q_len, D)
    """
    q = q_ref[0]                              # (G*M, D) f32
    k = k_ref[0]                              # (G*N, D) f32
    v = v_ref[0]                              # (G*N, D) f32

    # qk = q @ k^T for ALL packed heads in one MXU contraction over D
    # (no materialized transpose of k).  Shape (G*M, G*N).
    s = lax.dot_general(
        q, k,
        dimension_numbers=(((1,), (1,)), ((), ())),
        preferred_element_type=jnp.float32)

    # scaled_qk = qk.div(1/sqrt(32))  ==  qk * sqrt(32)  (compile-time multiply)
    s = s * _SCALE_MUL

    # Kill cross-head (off-block-diagonal) logits so each row's softmax only sees
    # its own head's keys.  Mask is built once per grid step from two iotas plus a
    # short unrolled chain of compares (no integer division, no loops at runtime).
    if heads > 1:
        rows = lax.broadcasted_iota(jnp.int32, s.shape, 0)
        cols = lax.broadcasted_iota(jnp.int32, s.shape, 1)
        valid = None
        for g in range(heads):
            blk = ((rows >= g * q_len) & (rows < (g + 1) * q_len)
                   & (cols >= g * k_len) & (cols < (g + 1) * k_len))
            valid = blk if valid is None else (valid | blk)
        s = jnp.where(valid, s, _NEG_BIG)

    # Numerically-stable softmax over the packed key dim.  Exact division for the
    # normalization (approx reciprocal caused the previous 0.3% per-row scale error).
    mx = jnp.max(s, axis=-1, keepdims=True)
    e = jnp.exp(s - mx)                       # masked entries underflow to exactly 0
    denom = jnp.sum(e, axis=-1, keepdims=True)
    p = e / denom

    # TODO(synk): nn.Dropout(p=0.5) is identity in eval mode; training-mode masking
    # would need pltpu.prng_seed/prng_random_bits + 1/(1-p) rescale.

    # output = p @ v.  Cross-head probabilities are exactly 0, so each packed output
    # row is that head's correct (M, D) result.
    o_ref[0] = jnp.dot(p, v, preferred_element_type=jnp.float32)


def attention(q, k, v):
    """q: (..., M, D), k: (..., N, D), v: (..., N, D) -> (..., M, D), float32.

    Leading dims are folded into a batch axis B; G heads are packed per grid step
    (grid = (B // G,)), with the packing done by free contiguous reshapes."""
    q = jnp.asarray(q, jnp.float32)
    k = jnp.asarray(k, jnp.float32)
    v = jnp.asarray(v, jnp.float32)

    batch_dims = q.shape[:-2]
    M, d = q.shape[-2:]
    N, dk = k.shape[-2:]
    assert d == dk and v.shape[-2:] == (N, dk)

    B = int(np.prod(batch_dims)) if batch_dims else 1
    G = _choose_group(B, N)
    nblk = B // G

    # Contiguous (free) reshapes: (B, M, D) -> (B/G, G*M, D) etc.  No pad, no copy.
    q3 = q.reshape(nblk, G * M, d)
    k3 = k.reshape(nblk, G * N, d)
    v3 = v.reshape(nblk, G * N, d)

    kernel = functools.partial(_attn_kernel, heads=G, q_len=M, k_len=N)

    out = pl.pallas_call(
        kernel,
        out_shape=jax.ShapeDtypeStruct((nblk, G * M, d), jnp.float32),
        grid=(nblk,),
        in_specs=[
            # Last two block dims equal the full array dims -> Mosaic pads internally,
            # no wrapper-side padding or in-kernel key mask needed.
            pl.BlockSpec((1, G * M, d), lambda b: (b, 0, 0)),
            pl.BlockSpec((1, G * N, d), lambda b: (b, 0, 0)),
            pl.BlockSpec((1, G * N, d), lambda b: (b, 0, 0)),
        ],
        out_specs=pl.BlockSpec((1, G * M, d), lambda b: (b, 0, 0)),
        compiler_params=pltpu.CompilerParams(
            dimension_semantics=("parallel",)),
    )(q3, k3, v3)

    out = out.reshape(*batch_dims, M, d)      # free reshape back to (..., M, D)
    return out


def _reference(q, k, v):
    # Pure-JAX reference mirroring the PyTorch module (eval-mode dropout = identity).
    # HIGHEST precision so the reference itself is exact f32.
    qk = jnp.matmul(q, jnp.swapaxes(k, -1, -2), precision=lax.Precision.HIGHEST)
    scaled = qk * _SCALE_MUL                  # == qk / (1/sqrt(32)) up to 1 f32 ulp
    p = jax.nn.softmax(scaled, axis=-1)
    return jnp.matmul(p, v, precision=lax.Precision.HIGHEST)


if __name__ == "__main__":
    key = jax.random.PRNGKey(0)
    kq, kk, kv = jax.random.split(key, 3)

    # Mirror the reference data: random integers in [0, 100) cast to float32.
    q = jax.random.randint(kq, (10, D), 0, 100).astype(jnp.float32)
    k = jax.random.randint(kk, (15, D), 0, 100).astype(jnp.float32)
    v = jax.random.randint(kv, (15, D), 0, 100).astype(jnp.float32)

    out = attention(q, k, v)
    jax.block_until_ready(out)
    ref = _reference(q, k, v)
    np.testing.assert_allclose(np.asarray(out), np.asarray(ref), rtol=1e-3, atol=5e-2)

    # Batched (multi-head style): B=4 -> G=2 packed heads per step, grid=(2,).
    kb = jax.random.split(jax.random.PRNGKey(1), 3)
    qb = jax.random.randint(kb[0], (4, 10, D), 0, 100).astype(jnp.float32)
    kbk = jax.random.randint(kb[1], (4, 15, D), 0, 100).astype(jnp.float32)
    vb = jax.random.randint(kb[2], (4, 15, D), 0, 100).astype(jnp.float32)

    outb = attention(qb, kbk, vb)
    jax.block_until_ready(outb)
    refb = _reference(qb, kbk, vb)
    np.testing.assert_allclose(np.asarray(outb), np.asarray(refb), rtol=1e-3, atol=5e-2)

    # Larger batch: B=16 -> G=8 packed heads (lane-dense 120-col softmax tile), grid=(2,).
    kc = jax.random.split(jax.random.PRNGKey(2), 3)
    qc = jax.random.randint(kc[0], (16, 10, D), 0, 100).astype(jnp.float32)
    kck = jax.random.randint(kc[1], (16, 15, D), 0, 100).astype(jnp.float32)
    vc = jax.random.randint(kc[2], (16, 15, D), 0, 100).astype(jnp.float32)

    outc = attention(qc, kck, vc)
    jax.block_until_ready(outc)
    refc = _reference(qc, kck, vc)
    np.testing.assert_allclose(np.asarray(outc), np.asarray(refc), rtol=1e-3, atol=5e-2)

    print("KERNEL_OK")
</pallas_src>

<mosaic_0001>
module attributes {stable_mosaic.version = 11 : i64} {
  func.func @_attn_kernel(%arg0: i32, %arg1: memref<1x10x32xf32, #tpu.memory_space<vmem>>, %arg2: memref<1x15x32xf32, #tpu.memory_space<vmem>>, %arg3: memref<1x15x32xf32, #tpu.memory_space<vmem>>, %arg4: memref<1x10x32xf32, #tpu.memory_space<vmem>>) attributes {dimension_semantics = [#tpu.dimension_semantics<parallel>], iteration_bounds = array<i64: 1>, scalar_prefetch = 0 : i64, scratch_operands = 0 : i64, tpu.core_type = #tpu.core_type<tc>, window_params = [{transform_indices = @transform_0, window_bounds = array<i64: 1, 10, 32>}, {transform_indices = @transform_1, window_bounds = array<i64: 1, 15, 32>}, {transform_indices = @transform_2, window_bounds = array<i64: 1, 15, 32>}, {transform_indices = @transform_3, window_bounds = array<i64: 1, 10, 32>}]} {
    %c0 = arith.constant 0 : index
    %c0_0 = arith.constant 0 : index
    %c0_1 = arith.constant 0 : index
    %0 = vector.load %arg1[%c0, %c0_0, %c0_1] : memref<1x10x32xf32, #tpu.memory_space<vmem>>, vector<1x10x32xf32>
    %1 = vector.shape_cast %0 : vector<1x10x32xf32> to vector<10x32xf32>
    %c0_2 = arith.constant 0 : index
    %c0_3 = arith.constant 0 : index
    %c0_4 = arith.constant 0 : index
    %2 = vector.load %arg2[%c0_2, %c0_3, %c0_4] : memref<1x15x32xf32, #tpu.memory_space<vmem>>, vector<1x15x32xf32>
    %3 = vector.shape_cast %2 : vector<1x15x32xf32> to vector<15x32xf32>
    %c0_5 = arith.constant 0 : index
    %c0_6 = arith.constant 0 : index
    %c0_7 = arith.constant 0 : index
    %4 = vector.load %arg3[%c0_5, %c0_6, %c0_7] : memref<1x15x32xf32, #tpu.memory_space<vmem>>, vector<1x15x32xf32>
    %5 = vector.shape_cast %4 : vector<1x15x32xf32> to vector<15x32xf32>
    %cst = arith.constant dense<0.000000e+00> : vector<10x15xf32>
    %6 = tpu.matmul %1, %3, %cst {dimension_numbers = #tpu.dot_dimension_numbers<[1], [1], [0], [0], [0, 0, 1, 0], [], []>} : vector<10x32xf32>, vector<15x32xf32>, vector<10x15xf32> -> vector<10x15xf32>
    %cst_8 = arith.constant 5.65685415 : f32
    %7 = vector.broadcast %cst_8 : f32 to vector<10x15xf32>
    %8 = arith.mulf %6, %7 : vector<10x15xf32>
    %cst_9 = arith.constant dense<0xFF800000> : vector<10xf32>
    %9 = vector.multi_reduction <maximumf>, %8, %cst_9 [1] : vector<10x15xf32> to vector<10xf32>
    %10 = vector.shape_cast %9 : vector<10xf32> to vector<10x1xf32>
    %11 = vector.broadcast %10 : vector<10x1xf32> to vector<10x15xf32>
    %12 = arith.subf %8, %11 : vector<10x15xf32>
    %13 = math.exp %12 : vector<10x15xf32>
    %cst_10 = arith.constant dense<0.000000e+00> : vector<10xf32>
    %14 = vector.multi_reduction <add>, %13, %cst_10 [1] : vector<10x15xf32> to vector<10xf32>
    %15 = vector.shape_cast %14 : vector<10xf32> to vector<10x1xf32>
    %16 = vector.broadcast %15 : vector<10x1xf32> to vector<10x15xf32>
    %17 = arith.divf %13, %16 : vector<10x15xf32>
    %cst_11 = arith.constant dense<0.000000e+00> : vector<10x32xf32>
    %18 = tpu.matmul %17, %5, %cst_11 {dimension_numbers = #tpu.dot_dimension_numbers<[1], [0], [0], [1], [0, 0, 1, 1], [], []>} : vector<10x15xf32>, vector<15x32xf32>, vector<10x32xf32> -> vector<10x32xf32>
    %c0_12 = arith.constant 0 : index
    %c0_13 = arith.constant 0 : index
    %c0_14 = arith.constant 0 : index
    %19 = vector.load %arg4[%c0_12, %c0_13, %c0_14] : memref<1x10x32xf32, #tpu.memory_space<vmem>>, vector<1x10x32xf32>
    %20 = vector.shape_cast %19 : vector<1x10x32xf32> to vector<10x32xf32>
    %21 = vector.shape_cast %18 : vector<10x32xf32> to vector<1x10x32xf32>
    tpu.vector_store %arg4[%c0_12, %c0_13, %c0_14], %21 {strides = array<i32>} : memref<1x10x32xf32, #tpu.memory_space<vmem>>, vector<1x10x32xf32>,
    return
  }
  func.func @transform_0(%arg0: i32) -> (i32, i32, i32) {
    %c0_i32 = arith.constant 0 : i32
    %c0_i32_0 = arith.constant 0 : i32
    %c0_i32_1 = arith.constant 0 : i32
    return %arg0, %c0_i32, %c0_i32_0 : i32, i32, i32
  }
  func.func @transform_1(%arg0: i32) -> (i32, i32, i32) {
    %c0_i32 = arith.constant 0 : i32
    %c0_i32_0 = arith.constant 0 : i32
    %c0_i32_1 = arith.constant 0 : i32
    return %arg0, %c0_i32, %c0_i32_0 : i32, i32, i32
  }
  func.func @transform_2(%arg0: i32) -> (i32, i32, i32) {
    %c0_i32 = arith.constant 0 : i32
    %c0_i32_0 = arith.constant 0 : i32
    %c0_i32_1 = arith.constant 0 : i32
    return %arg0, %c0_i32, %c0_i32_0 : i32, i32, i32
  }
  func.func @transform_3(%arg0: i32) -> (i32, i32, i32) {
    %c0_i32 = arith.constant 0 : i32
    %c0_i32_0 = arith.constant 0 : i32
    %c0_i32_1 = arith.constant 0 : i32
    return %arg0, %c0_i32, %c0_i32_0 : i32, i32, i32
  }
}

</mosaic_0001>

<bundles_post_ra>
// kernel: tpu_custom_call.1
= control target key start
LH: loop header
LB: loop body
LE: loop exit
PB: predicated region body
PF: predicated region fallthrough
CT: control target
= control target key end

     0   :  { %vm20_vm0 = vcmask 261120   ;;  %vm110_vm2 = vcmask 121856   ;;  %vm114_vm3 = vcmask 115712   ;;  %vm140_vm4 = vcmask 1046528   ;;  %s330_s1 = inlined_call_operand.vmem [shape: f32[1,15,32], index: 1, kind: input, shape index: {}]   ;;  %s331_s0 = inlined_call_operand.vmem [shape: f32[1,10,32], index: 0, kind: input, shape index: {}]   ;;  %s332_s2 = inlined_call_operand.vmem [shape: f32[1,15,32], index: 2, kind: input, shape index: {}]   ;;  %s333_s3 = inlined_call_operand.vmem [shape: f32[1,10,32], index: 3, kind: output, shape index: {}]  }
   0x1   :  { %v16_v0 = vld [vmem:[%s330_s1] sm:$0xff]  ;;  %v17_v1 = vld [vmem:[%s330_s1 + $0x8] sm:$0x7f]  ;;  %vm256_vm1 = vmpackc.low %vm20_vm0, %vm20_vm0  ;;  %vm276_vm5 = vmmov 1   ;;  %vm220_vm7 = vcmask 254976  }
   0x2   :  { %v255_v2 = vpack.c.bf16 %v17_v1, %v16_v0  ;;  %v14_v3 = vld [vmem:[%s331_s0] sm:$0xff]  ;;  %v15_v4 = vld [vmem:[%s331_s0 + $0x8] sm:$0x3]  ;;  %vm262_vm6 = vmpackc.low %vm140_vm4, %vm276_vm5 }
   0x3   :  { %245 = vmatprep.mubr.msk.f32.mxu0 %vm20_vm0, %v14_v3  ;;  %v18_v21 = vld [vmem:[%s332_s2] sm:$0xff]  ;;  %v19_v22 = vld [vmem:[%s332_s2 + $0x8] sm:$0x7f] }
   0x4   :  { %257 = vmatprep.subr.msk.bf16.mxu0 %vm256_vm1, %v255_v2  ;;  %v261_v23 = vpack.c.bf16 %v19_v22, %v18_v21 }
   0x5   :  { %260 = vmatpush3.bf16.xpose.msk.msra.mxu0 %vm256_vm1, %v255_v2 }
   0x6   :  { %263 = vmatprep.subr.msk.bf16.mxu1 %vm262_vm6, %v261_v23 }
   0x7   :  { %266 = vmatpush3.bf16.msk.msra.mxu1 %vm262_vm6, %v261_v23 }
   0xc   :  { %246 = vmatmul.mubr.msk.f32.vlgmr.msra.gmra.mrb[0].mxu0 %vm20_vm0, %v15_v4 }
  0xdf   :  { %v247_v5 = vpop.f32.mrb[0].mxu0 }
  0xe0   :  { %v99_v6 = vpop.f32.mrb[1].mxu0  ;;  %v109_v8 = vmul.f32 5.656854, %v247_v5 }
  0xe1   :  { %v108_v7 = vmul.f32 5.656854, %v99_v6 }
  0xe2   :  { %v115_v10 = vsel %vm114_vm3, %v109_v8, -inf }
  0xe3   :  { %v111_v9 = vsel %vm110_vm2, %v108_v7, -inf }
  0xe4   :  { %112 = vmax.xlane.f32.xlu0 %v111_v9 }
  0xe8   :  { %116 = vmax.xlane.f32.xlu0 %v115_v10 }
 0x171   :  { %v113_v11 = vpop.xlane.xlu0 %112 }
 0x172   :  { %v118_v12 = vsub.f32 %v108_v7, %v113_v11 }
 0x174   :  { %v120_v13 = vmul.f32 1.442695, %v118_v12 }
 0x175   :  { %v117_v14 = vpop.xlane.xlu0 %116 }
 0x176   :  { %268 = vpow2.f32 %v120_v13  ;;  %v119_v15 = vsub.f32 %v109_v8, %v117_v14 }
 0x178   :  { %v122_v16 = vmul.f32 1.442695, %v119_v15 }
 0x17a   :  { %270 = vpow2.f32 %v122_v16 }
 0x180   :  { %v269_v17 = vpop.eup %268 }
 0x181   :  { %v124_v18 = vsel %vm110_vm2, %v269_v17, 0.0 }
 0x182   :  { %125 = vadd.xlane.f32.xlu1 %v124_v18 }
 0x184   :  { %v271_v19 = vpop.eup %270 }
 0x185   :  { %v127_v20 = vsel %vm114_vm3, %v271_v19, 0.0 }
 0x186   :  { %128 = vadd.xlane.f32.xlu1 %v127_v20 }
 0x20f   :  { %v126_v24 = vpop.xlane.xlu1 %125 }
 0x210   :  { %272 = vrcp.f32 %v126_v24 }
 0x213   :  { %v129_v25 = vpop.xlane.xlu1 %128 }
 0x214   :  { %274 = vrcp.f32 %v129_v25 }
 0x21a   :  { %v273_v26 = vpop.eup %272 }
 0x21b   :  { %v131_v27 = vmul.f32 %v273_v26, %v269_v17 }
 0x21d   :  { %252 = vmatprep.mubr.msk.f32.mxu1 %vm110_vm2, %v131_v27 }
 0x21e   :  { %v275_v28 = vpop.eup %274 }
 0x21f   :  { %v133_v29 = vmul.f32 %v275_v28, %v271_v19 }
 0x221   :  { %253 = vmatmul.mubr.msk.f32.vlgmr.msra.gmra.mrb[0].mxu1 %vm110_vm2, %v133_v29 }
 0x2f4   :  { %v254_v30 = vpop.f32.mrb[0].mxu1 }
 0x2f5   :  { %221 = vst.msk [vmem:[%s333_s3 + $0x8] sm:$0x3] %vm220_vm7, %v254_v30  ;;  %v210_v31 = vpop.f32.mrb[1].mxu1 }
 0x2f6   :  { %219 = vst.msk [vmem:[%s333_s3] sm:$0xff] %vm20_vm0, %v210_v31 }

</bundles_post_ra>
